<compile_context>
chip_gen: v7x
topology: tpu7x:2x2x1
jax: 0.10.0
libtpu: 0.0.40
codegen_flags: <defaults>
</compile_context>

<pallas_src>
import functools
import math

import jax
import jax.numpy as jnp
from jax.experimental import pallas as pl
from jax.experimental.pallas import tpu as pltpu

_OUT_LANES = 128                 # one lane-dense partial-sum block per core slice
_TARGET_TB_WHEN_TILING_N = 512   # target row tile when the lane axis must be split


def _device_generation():
    try:
        kind = jax.devices()[0].device_kind.lower()
    except Exception:
        return 6
    for token, gen in (("v7", 7), ("7x", 7), ("v6", 6), ("v5", 5), ("v4", 4)):
        if token in kind:
            return gen
    return 6


def _vmem_config(gen):
    """(input-tile budget bytes, explicit vmem_limit_bytes) per generation."""
    if gen >= 7:
        # v7x: only 64 MiB physical VMEM per TensorCore.
        return 40 * 1024 * 1024, 56 * 1024 * 1024
    # v5e / v6e (and older): 128 MiB physical; raise well past the scoped default.
    return 48 * 1024 * 1024, 80 * 1024 * 1024


def _choose_tiles(batch, n, num_cores, budget):
    """Pick (tb, tn, n_steps): row tile, lane tile, number of lane-axis steps.

    Budget model: 2 negative inputs x 2 pipeline buffers x tb x tn x 4 B, plus
    (when the lane axis is tiled) 4 lane-padded (tb,1)->(tb,128) f32 scratch
    buffers for the online logsumexp.
    """
    if 16 * n * 256 <= budget:
        # Full-width N still allows >=256-row tiles: keep N un-tiled.
        tn = n
        n_steps = 1
        per_row = 16 * n
    else:
        # Wide N: tile the lane axis, aiming for ~_TARGET_TB rows per tile.
        per_row_allow = budget // _TARGET_TB_WHEN_TILING_N
        tn = ((per_row_allow - 2048) // 16) // 128 * 128
        tn = max(128, min(tn, ((n + 127) // 128) * 128))
        n_steps = pl.cdiv(n, tn)
        if n_steps == 1:          # safety: ended up covering all of N anyway
            tn = n
            per_row = 16 * n
        else:
            per_row = 16 * tn + 4 * 128 * 4
    tb = (budget // per_row) // 8 * 8
    tb = max(8, min(tb, 32768))
    if batch <= 8:
        tb = batch                # full-dim row block for tiny batches
    else:
        tb = min(tb, max(8, (pl.cdiv(batch, num_cores) // 8) * 8))
    return tb, tn, n_steps


def _loss_kernel(n1_ref, n2_ref, o_ref, *scratch, batch, n, tb, tn,
                 row_steps, n_steps, needs_row_mask):
    c = pl.program_id(0)   # core slice ("parallel"; size 1 on 1-TC chips)
    s = pl.program_id(1)   # row-tile step within the slice ("arbitrary")
    ns = pl.program_id(2)  # lane-axis step ("arbitrary", size 1 for narrow N)

    @pl.when(jnp.logical_and(s == 0, ns == 0))
    def _():
        o_ref[...] = jnp.zeros_like(o_ref)

    x1 = n1_ref[...]       # (tb, tn) f32
    x2 = n2_ref[...]       # (tb, tn) f32

    if n % tn != 0:
        # Ragged lane tail: mask padded columns to -inf so they contribute
        # nothing to max / sum(exp).  (Static no-op when tn divides n.)
        cols = ns * tn + jax.lax.broadcasted_iota(jnp.int32, (tb, tn), 1)
        valid = cols < n
        x1 = jnp.where(valid, x1, -jnp.inf)
        x2 = jnp.where(valid, x2, -jnp.inf)

    def accumulate(lse_rows):
        # lse_rows: (tb, 1) per-row lse(n1)+lse(n2).  Mask rows past the true
        # batch (ragged tail / clamped duplicate tiles); jnp.where is an
        # elementwise select, so garbage/NaN in padded rows never reaches the
        # accumulated sum.  Skipped statically when the batch tiles evenly.
        if needs_row_mask:
            row0 = (c * row_steps + s) * tb
            rows = row0 + jax.lax.broadcasted_iota(jnp.int32, (tb, 1), 0)
            lse_rows = jnp.where(rows < batch, lse_rows, 0.0)
        # Scalar broadcast-accumulate across the (1, 128) block: the store is
        # a full, unmasked lane-dense vector store.
        o_ref[...] += jnp.sum(lse_rows)

    if n_steps == 1:
        # Direct per-row logsumexp (narrow N: whole row in one tile).
        max1 = jnp.max(x1, axis=-1, keepdims=True)
        max2 = jnp.max(x2, axis=-1, keepdims=True)
        sum1 = jnp.sum(jnp.exp(x1 - max1), axis=-1, keepdims=True)
        sum2 = jnp.sum(jnp.exp(x2 - max2), axis=-1, keepdims=True)
        accumulate(max1 + max2 + jnp.log(sum1 * sum2))   # one log, not two
    else:
        # Online logsumexp over lane-axis tiles (wide N).
        m1, l1, m2, l2 = scratch

        @pl.when(ns == 0)
        def _():
            m1[...] = jnp.full_like(m1, -jnp.inf)
            l1[...] = jnp.zeros_like(l1)
            m2[...] = jnp.full_like(m2, -jnp.inf)
            l2[...] = jnp.zeros_like(l2)

        tmax1 = jnp.max(x1, axis=-1, keepdims=True)
        mnew1 = jnp.maximum(m1[...], tmax1)
        l1[...] = (l1[...] * jnp.exp(m1[...] - mnew1)
                   + jnp.sum(jnp.exp(x1 - mnew1), axis=-1, keepdims=True))
        m1[...] = mnew1

        tmax2 = jnp.max(x2, axis=-1, keepdims=True)
        mnew2 = jnp.maximum(m2[...], tmax2)
        l2[...] = (l2[...] * jnp.exp(m2[...] - mnew2)
                   + jnp.sum(jnp.exp(x2 - mnew2), axis=-1, keepdims=True))
        m2[...] = mnew2

        @pl.when(ns == n_steps - 1)
        def _():
            accumulate(m1[...] + m2[...] + jnp.log(l1[...] * l2[...]))


def softmax_loss_reduction_mean(positive, negative_1, negative_2, *, force_tn=None):
    """positive: (B, 1); negative_1, negative_2: (B, N). Returns scalar f32."""
    batch, n = negative_1.shape
    gen = _device_generation()
    num_cores = 2 if gen >= 7 else 1            # 2 TCs only on v7x
    budget, vmem_limit = _vmem_config(gen)

    tb, tn, n_steps = _choose_tiles(batch, n, num_cores, budget)
    if force_tn is not None:                    # test hook: force lane tiling
        tn = force_tn
        n_steps = pl.cdiv(n, tn)

    row_steps = pl.cdiv(pl.cdiv(batch, num_cores), tb)   # row tiles per core slice
    n_row_blocks = pl.cdiv(batch, tb)                    # valid row tiles in array
    needs_row_mask = (num_cores * row_steps * tb) != batch

    def neg_block(c, s, ns):
        # Clamp so duplicated tail tiles re-read the last valid block instead
        # of issuing an out-of-bounds DMA; the kernel masks those rows anyway.
        return (jnp.minimum(c * row_steps + s, n_row_blocks - 1), ns)

    scratch_shapes = ()
    if n_steps > 1:
        scratch_shapes = tuple(pltpu.VMEM((tb, 1), jnp.float32) for _ in range(4))

    kernel = functools.partial(
        _loss_kernel, batch=batch, n=n, tb=tb, tn=tn,
        row_steps=row_steps, n_steps=n_steps, needs_row_mask=needs_row_mask)

    out = pl.pallas_call(
        kernel,
        out_shape=jax.ShapeDtypeStruct((1, num_cores * _OUT_LANES), jnp.float32),
        grid_spec=pltpu.PrefetchScalarGridSpec(
            num_scalar_prefetch=0,
            grid=(num_cores, row_steps, n_steps),
            in_specs=[
                pl.BlockSpec((tb, tn), neg_block),
                pl.BlockSpec((tb, tn), neg_block),
            ],
            out_specs=pl.BlockSpec((1, _OUT_LANES), lambda c, s, ns: (0, c)),
            scratch_shapes=scratch_shapes,
        ),
        compiler_params=pltpu.CompilerParams(
            dimension_semantics=("parallel", "arbitrary", "arbitrary"),
            vmem_limit_bytes=vmem_limit),
        cost_estimate=pl.CostEstimate(
            flops=8 * batch * n,
            transcendentals=2 * batch * n + 2 * batch,
            bytes_accessed=2 * batch * n * 4 + num_cores * _OUT_LANES * 4,
        ),
    )(negative_1, negative_2)

    lse_sum = jnp.sum(out.reshape(num_cores, _OUT_LANES)[:, 0])
    pos_sum = jnp.sum(positive)
    # -mean(2*pos - lse1 - lse2 + 2*log(N))
    return (lse_sum - 2.0 * pos_sum) / batch - 2.0 * math.log(n)


def _reference(positive, negative_1, negative_2):
    max1 = jnp.max(negative_1, axis=1, keepdims=True)
    max2 = jnp.max(negative_2, axis=1, keepdims=True)
    den1 = jnp.mean(jnp.exp(negative_1 - max1), axis=-1, keepdims=True)
    den2 = jnp.mean(jnp.exp(negative_2 - max2), axis=-1, keepdims=True)
    losses = 2.0 * positive - max1 - max2 - jnp.log(den1) - jnp.log(den2)
    return -jnp.mean(losses)


if __name__ == "__main__":
    key = jax.random.PRNGKey(0)
    k_pos, k_n1, k_n2, k_p2, k_n3, k_n4 = jax.random.split(key, 6)

    # Case 1: narrow N -> direct per-row logsumexp path; B=12 is deliberately
    # not a multiple of the 8-row tile so the ragged-row masking is exercised.
    B, N = 12, 128
    positive = jax.random.normal(k_pos, (B, 1), dtype=jnp.float32)
    negative_1 = jax.random.normal(k_n1, (B, N), dtype=jnp.float32)
    negative_2 = jax.random.normal(k_n2, (B, N), dtype=jnp.float32)
    loss = jax.block_until_ready(
        softmax_loss_reduction_mean(positive, negative_1, negative_2))
    ref = _reference(positive, negative_1, negative_2)
    assert jnp.allclose(loss, ref, rtol=1e-5, atol=1e-5), (loss, ref)

    # Case 2: ragged N with a forced 128-lane tile -> exercises the online
    # logsumexp (wide-N) path including the padded-column masking.
    B2, N2 = 12, 300
    positive2 = jax.random.normal(k_p2, (B2, 1), dtype=jnp.float32)
    negative_3 = jax.random.normal(k_n3, (B2, N2), dtype=jnp.float32)
    negative_4 = jax.random.normal(k_n4, (B2, N2), dtype=jnp.float32)
    loss2 = jax.block_until_ready(
        softmax_loss_reduction_mean(positive2, negative_3, negative_4,
                                    force_tn=128))
    ref2 = _reference(positive2, negative_3, negative_4)
    assert jnp.allclose(loss2, ref2, rtol=1e-5, atol=1e-5), (loss2, ref2)

    print("KERNEL_OK")
</pallas_src>

<mosaic_0001>
module attributes {stable_mosaic.version = 11 : i64} {
  func.func @_loss_kernel(%arg0: i32, %arg1: i32, %arg2: i32, %arg3: memref<8x128xf32, #tpu.memory_space<vmem>>, %arg4: memref<8x128xf32, #tpu.memory_space<vmem>>, %arg5: memref<1x128xf32, #tpu.memory_space<vmem>>) attributes {dimension_semantics = [#tpu.dimension_semantics<parallel>, #tpu.dimension_semantics<arbitrary>, #tpu.dimension_semantics<arbitrary>], iteration_bounds = array<i64: 1, 2, 1>, scalar_prefetch = 0 : i64, scratch_operands = 0 : i64, tpu.core_type = #tpu.core_type<tc>, window_params = [{transform_indices = @transform_0, window_bounds = array<i64: 8, 128>}, {transform_indices = @transform_1, window_bounds = array<i64: 8, 128>}, {transform_indices = @transform_2, window_bounds = array<i64: 1, 128>}]} {
    %c0_i32 = arith.constant 0 : i32
    %0 = arith.cmpi eq, %arg1, %c0_i32 : i32
    %c0_i32_0 = arith.constant 0 : i32
    %1 = arith.cmpi eq, %arg2, %c0_i32_0 : i32
    %2 = arith.andi %0, %1 : i1
    %3 = arith.extui %2 : i1 to i32
    %c0_i32_1 = arith.constant 0 : i32
    %4 = arith.cmpi ne, %3, %c0_i32_1 : i32
    scf.if %4 {
      %cst_14 = arith.constant 0.000000e+00 : f32
      %43 = vector.broadcast %cst_14 : f32 to vector<1x128xf32>
      %c0_15 = arith.constant 0 : index
      %c0_16 = arith.constant 0 : index
      %44 = vector.load %arg5[%c0_15, %c0_16] : memref<1x128xf32, #tpu.memory_space<vmem>>, vector<1x128xf32>
      tpu.vector_store %arg5[%c0_15, %c0_16], %43 {strides = array<i32>} : memref<1x128xf32, #tpu.memory_space<vmem>>, vector<1x128xf32>,
    } else {
    }
    %c0 = arith.constant 0 : index
    %c0_2 = arith.constant 0 : index
    %5 = vector.load %arg3[%c0, %c0_2] : memref<8x128xf32, #tpu.memory_space<vmem>>, vector<8x128xf32>
    %c0_3 = arith.constant 0 : index
    %c0_4 = arith.constant 0 : index
    %6 = vector.load %arg4[%c0_3, %c0_4] : memref<8x128xf32, #tpu.memory_space<vmem>>, vector<8x128xf32>
    %cst = arith.constant dense<0xFF800000> : vector<8xf32>
    %7 = vector.multi_reduction <maximumf>, %5, %cst [1] : vector<8x128xf32> to vector<8xf32>
    %8 = vector.shape_cast %7 : vector<8xf32> to vector<8x1xf32>
    %cst_5 = arith.constant dense<0xFF800000> : vector<8xf32>
    %9 = vector.multi_reduction <maximumf>, %6, %cst_5 [1] : vector<8x128xf32> to vector<8xf32>
    %10 = vector.shape_cast %9 : vector<8xf32> to vector<8x1xf32>
    %11 = vector.broadcast %8 : vector<8x1xf32> to vector<8x128xf32>
    %12 = arith.subf %5, %11 : vector<8x128xf32>
    %13 = math.exp %12 : vector<8x128xf32>
    %cst_6 = arith.constant dense<0.000000e+00> : vector<8xf32>
    %14 = vector.multi_reduction <add>, %13, %cst_6 [1] : vector<8x128xf32> to vector<8xf32>
    %15 = vector.shape_cast %14 : vector<8xf32> to vector<8x1xf32>
    %16 = vector.broadcast %10 : vector<8x1xf32> to vector<8x128xf32>
    %17 = arith.subf %6, %16 : vector<8x128xf32>
    %18 = math.exp %17 : vector<8x128xf32>
    %cst_7 = arith.constant dense<0.000000e+00> : vector<8xf32>
    %19 = vector.multi_reduction <add>, %18, %cst_7 [1] : vector<8x128xf32> to vector<8xf32>
    %20 = vector.shape_cast %19 : vector<8xf32> to vector<8x1xf32>
    %21 = arith.addf %8, %10 : vector<8x1xf32>
    %22 = arith.mulf %15, %20 : vector<8x1xf32>
    %23 = math.log %22 : vector<8x1xf32>
    %24 = arith.addf %21, %23 : vector<8x1xf32>
    %c2_i32 = arith.constant 2 : i32
    %25 = arith.muli %arg0, %c2_i32 : i32
    %26 = arith.addi %25, %arg1 : i32
    %c8_i32 = arith.constant 8 : i32
    %27 = arith.muli %26, %c8_i32 : i32
    %28 = tpu.iota {dimensions = array<i32: 0>} : vector<8x1xi32>
    %29 = vector.broadcast %27 : i32 to vector<8x1xi32>
    %30 = arith.addi %29, %28 : vector<8x1xi32>
    %c12_i32 = arith.constant 12 : i32
    %31 = vector.broadcast %c12_i32 : i32 to vector<8x1xi32>
    %32 = arith.cmpi slt, %30, %31 : vector<8x1xi32>
    %cst_8 = arith.constant 0.000000e+00 : f32
    %33 = vector.broadcast %cst_8 : f32 to vector<8x1xf32>
    %34 = arith.select %32, %24, %33 : vector<8x1xi1>, vector<8x1xf32>
    %c0_9 = arith.constant 0 : index
    %c0_10 = arith.constant 0 : index
    %35 = vector.load %arg5[%c0_9, %c0_10] : memref<1x128xf32, #tpu.memory_space<vmem>>, vector<1x128xf32>
    %36 = vector.shape_cast %34 : vector<8x1xf32> to vector<1x8x1xf32>
    %cst_11 = arith.constant dense<0.000000e+00> : vector<1xf32>
    %37 = vector.multi_reduction <add>, %36, %cst_11 [1, 2] : vector<1x8x1xf32> to vector<1xf32>
    %38 = vector.shape_cast %37 : vector<1xf32> to vector<1x1x1xf32>
    %39 = vector.extract %38[0, 0, 0] : f32 from vector<1x1x1xf32>
    %40 = vector.broadcast %39 : f32 to vector<1x128xf32>
    %41 = arith.addf %35, %40 : vector<1x128xf32>
    %c0_12 = arith.constant 0 : index
    %c0_13 = arith.constant 0 : index
    %42 = vector.load %arg5[%c0_12, %c0_13] : memref<1x128xf32, #tpu.memory_space<vmem>>, vector<1x128xf32>
    tpu.vector_store %arg5[%c0_12, %c0_13], %41 {strides = array<i32>} : memref<1x128xf32, #tpu.memory_space<vmem>>, vector<1x128xf32>,
    return
  }
  func.func @transform_0(%arg0: i32, %arg1: i32, %arg2: i32) -> (i32, i32) {
    %c2_i32 = arith.constant 2 : i32
    %0 = arith.muli %arg0, %c2_i32 : i32
    %1 = arith.addi %0, %arg1 : i32
    %c1_i32 = arith.constant 1 : i32
    %2 = arith.minsi %1, %c1_i32 : i32
    %c0_i32 = arith.constant 0 : i32
    return %2, %arg2 : i32, i32
  }
  func.func @transform_1(%arg0: i32, %arg1: i32, %arg2: i32) -> (i32, i32) {
    %c2_i32 = arith.constant 2 : i32
    %0 = arith.muli %arg0, %c2_i32 : i32
    %1 = arith.addi %0, %arg1 : i32
    %c1_i32 = arith.constant 1 : i32
    %2 = arith.minsi %1, %c1_i32 : i32
    %c0_i32 = arith.constant 0 : i32
    return %2, %arg2 : i32, i32
  }
  func.func @transform_2(%arg0: i32, %arg1: i32, %arg2: i32) -> (i32, i32) {
    %c0_i32 = arith.constant 0 : i32
    %c0_i32_0 = arith.constant 0 : i32
    return %c0_i32, %arg0 : i32, i32
  }
}

</mosaic_0001>

<bundles_post_ra>
// kernel: tpu_custom_call.1
= control target key start
LH: loop header
LB: loop body
LE: loop exit
PB: predicated region body
PF: predicated region fallthrough
CT: control target
= control target key end

     0   :  { %7 = vsyncpa [#allocation3], 0  ;;  %s852_s0 = inlined_call_operand.hbm [shape: f32[12,128], index: 0, kind: input, shape index: {}]   ;;  %s853_s1 = inlined_call_operand.hbm [shape: f32[12,128], index: 1, kind: input, shape index: {}]   ;;  %s854_s2 = inlined_call_operand.hbm [shape: f32[1,128], index: 2, kind: output, shape index: {}]  }
   0x1   :  { %9 = vsyncpa [#allocation3 + $0x1], 0 }
   0x2   :  { %10 = vsyncpa [#allocation6], 0 }
   0x3   :  { %12 = vsyncpa [#allocation6 + $0x1], 0 }
   0x4   :  { %13 = vsyncpa [#allocation4], 0  ;;  %s654_s9 = smov 0   ;;  %s656_s10 = smov 0  }
   0x5   :  { %s658_s11 = smov 0   ;;  %s660_s12 = smov 0  }
   0x6   :  { %s662_s13 = smov 0   ;;  %s664_s14 = smov 0  }
   0x7 LB: > { %s396_s15 = sadd.s32 4294967295, %s633_s14   ;;  %s34_s16 = sadd.s32 1, %s629_s13  ;;  %s633_s14 = sphi %s664_s14, %s19_s14   ;;  %s629_s13 = sphi %s662_s13, %s868_s13   ;;  %s625_s12 = sphi %s660_s12, %s867_s12   ;;  %s621_s11 = sphi %s658_s11, %s866_s11   ;;  %s617_s10 = sphi %s656_s10, %s865_s10   ;;  %s613_s9 = sphi %s654_s9, %s864_s9  }
   0x8   : > { %p36_p0 = scmp.ge.s32.totalorder %s34_s16, 2  ;;  %p44_p1 = scmp.lt.s32.totalorder %s629_s13, 1 }
   0x9   : > { %s55_s17 = sadd.s32 1, %s621_s11  ;;  %p62_p2 = scmp.ne.s32.totalorder %s621_s11, %s617_s10 }
   0xa   : > { %s870_s16 = smov (%p36_p0, %s34_s16), 0  ;;  %p63_p4 = scmp.eq.s32.totalorder %s633_s14, 0 }
   0xb   : > { %s691_s18 = scalar_select %p44_p1, %s629_s13, 1 }
   0xc   : > { %p48_p3 = scmp.lt.s32.totalorder %s870_s16, 1  ;;  %p68_p5 = scmp.ne.s32.totalorder %s617_s10, %s613_s9 }
   0xd   : > { %p69_p6 = scmp.eq.s32.totalorder %s396_s15, 0  ;;  %p64_p7 = por %p63_p4, %p62_p2 }
   0xe   : > { %s49_s19 = scalar_select %p48_p3, %s870_s16, 1 }
   0xf   : > { %p699_p8 = por %p69_p6, %p68_p5  ;;  %p430_p10 = scmp.lt.s32.totalorder %s633_s14, 2 }
  0x10   : > { %s50_s21 = ssub.s32 %s691_s18, %s49_s19  ;;  %s706_s22 = sand.u32 1, %s621_s11  }
  0x11   : > { %s856_s20 = scalar_select %p699_p8, 1, 0 }
  0x12   : > { %p53_p9 = scmp.eq.s32.totalorder %s50_s21, 0  ;;  %s400_s23 = sshll.u32 %s691_s18, 7 }
  0x13   : > { %s399_s25 = sshll.u32 %s706_s22, 3  ;;  %s718_s28 = scalar_lea.hbm %s852_s0, %s400_s23 }
  0x14   : > { %s710_s24 = scalar_select %p53_p9, %s621_s11, %s55_s17  }
  0x15   : > { %s158_s29 = scalar_lea.vmem [#allocation2], %s399_s25  ;;  %p722_p11 = pnand %p430_p10, %p64_p7 }
  0x16   : > { %s170_s30 = sshll.u32 %s158_s29, 4  ;;  %s155_s4 = scalar_lea.sflag [#allocation3], %s706_s22  ;;  %s726_s30 = int_to_ptr.vmem [resolvable:$true] %s170_s30 }
  0x17   : > { %s489_s5 = scalar_lea.hbm %s718_s28, 128  ;;  %p491_p1 = pneg %p722_p11 }
  0x18   : > { %p490_p0 = scmp.ne.s32.totalorder %s718_s28, %s489_s5  ;;  %s494_s8 = scalar_lea.hbm %s852_s0, 256 }
  0x19   : > { %p495_p4 = scmp.lt.u32.totalorder %s718_s28, %s852_s0  ;;  %p496_p5 = scmp.lt.u32.totalorder %s494_s8, %s489_s5 }
  0x1a   : > { %p492_p2 = pnand %p491_p1, %p490_p0  ;;  %p498_p7 = scmp.lt.u32.totalorder %s489_s5, %s718_s28 }
  0x1b   : > { %p497_p6 = por %p496_p5, %p495_p4 }
  0x1c   : > { %p493_p3 = pneg %p492_p2 }
  0x1d   : > { %p499_p9 = por %p498_p7, %p497_p6 }
  0x1f   : > { %p500_p10 = pnand %p499_p9, %p493_p3 }
  0x21   : > { %503 = shalt.err (!%p500_p10)
}
  0x22   : > { %s504_s19 = scalar_lea.vmem %s726_s30, 128  ;;  %s635_s21 = smov [#allocation2]  }
  0x23   : > { %p505_p0 = scmp.ne.s32.totalorder %s726_s30, %s504_s19  ;;  %s509_s26 = sshll.u32 %s635_s21, 4  ;;  %s510_s26 = int_to_ptr.vmem [resolvable:$false] %s509_s26 }
  0x24   : > { %s511_s27 = scalar_lea.vmem %s510_s26, 256  ;;  %p512_p13 = scmp.lt.s32.totalorder %s726_s30, %s510_s26 }
  0x25   : > { %p507_p2 = pnand %p505_p0, %p491_p1  ;;  %p513_p4 = scmp.lt.s32.totalorder %s511_s27, %s504_s19 }
  0x27   : > { %p508_p12 = pneg %p507_p2  ;;  %p514_p5 = por %p513_p4, %p512_p13 }
  0x29   : > { %p515_p6 = pnand %p514_p5, %p508_p12 }
  0x2b   : > { %518 = shalt.err (!%p515_p6)
}
  0x2c   : > { %426 = dma.hbm_to_vmem [thread:$0]  (!%p722_p11), %s718_s28, 128, %s726_s30, %s155_s4  }
  0x2d   : > { %p858_p3 = scmp.lt.s32.totalorder %s633_s14, 3  ;;  %p859_p7 = scmp.ge.s32.totalorder %s633_s14, 1 }
  0x2e   : > { %s769_s7 = scalar_lea.hbm %s853_s1, %s400_s23  ;;  %s181_s8 = scalar_lea.vmem [#allocation5], %s399_s25 }
  0x2f   : > { %p760_p9 = pnand %p859_p7, %p858_p3  ;;  %s193_s9 = sshll.u32 %s181_s8, 4  ;;  %s194_s9 = int_to_ptr.vmem [resolvable:$true] %s193_s9 }
  0x30   : > { %s178_s28 = scalar_lea.sflag [#allocation6], %s706_s22  ;;  %s519_s30 = scalar_lea.hbm %s769_s7, 128 }
  0x31   : > { %s860_s29 = scalar_select %p760_p9, 1, 0 }
  0x32   : > { %p520_p12 = scmp.ne.s32.totalorder %s769_s7, %s519_s30  ;;  %s524_s23 = scalar_lea.hbm %s853_s1, 256 }
  0x33   : > { %p525_p0 = scmp.lt.u32.totalorder %s769_s7, %s853_s1  ;;  %p526_p2 = scmp.lt.u32.totalorder %s524_s23, %s519_s30 }
  0x34   : > { %p522_p13 = pnand %p520_p12, %p491_p1  ;;  %p528_p5 = scmp.lt.u32.totalorder %s519_s30, %s769_s7 }
  0x35   : > { %p527_p4 = por %p526_p2, %p525_p0 }
  0x36   : > { %p523_p10 = pneg %p522_p13 }
  0x37   : > { %p529_p6 = por %p528_p5, %p527_p4 }
  0x39   : > { %p530_p3 = pnand %p529_p6, %p523_p10 }
  0x3b   : > { %533 = shalt.err (!%p530_p3)
}
  0x3c   : > { %s534_s22 = scalar_lea.vmem %s194_s9, 128  ;;  %s636_s25 = smov [#allocation5]  }
  0x3d   : > { %p535_p7 = scmp.ne.s32.totalorder %s194_s9, %s534_s22  ;;  %s539_s21 = sshll.u32 %s636_s25, 4  ;;  %s540_s21 = int_to_ptr.vmem [resolvable:$false] %s539_s21 }
  0x3e   : > { %s541_s26 = scalar_lea.vmem %s540_s21, 256  ;;  %p542_p8 = scmp.lt.s32.totalorder %s194_s9, %s540_s21 }
  0x3f   : > { %p537_p12 = pnand %p535_p7, %p491_p1  ;;  %p543_p9 = scmp.lt.s32.totalorder %s541_s26, %s534_s22 }
  0x41   : > { %p538_p13 = pneg %p537_p12  ;;  %p544_p0 = por %p543_p9, %p542_p8 }
  0x43   : > { %p545_p2 = pnand %p544_p0, %p538_p13 }
  0x45   : > { %548 = shalt.err (!%p545_p2)
}
  0x46   : > { %429 = dma.hbm_to_vmem [thread:$0]  (!%p722_p11), %s769_s7, 128, %s194_s9, %s178_s28  }
  0x47   : > { %p861_p10 = scmp.ne.s32.totalorder %s860_s29, 0 }
  0x48   : > { %s204_s27 = sand.u32 (!%p861_p10), 1, %s617_s10   ;;  %p862_p1 = scmp.ne.s32.totalorder (!%p861_p10), %s856_s20, 0 }
  0x49   : > { %202 = sbr.rel (%p861_p10) target bundleno = 637 (0x27d), region = 28  ;;  %s404_s5 = sshll.u32 (!%p861_p10), %s204_s27, 3 }
  0x4a   : > { %s205_s6 = scalar_lea.sflag (!%p861_p10), [#allocation3], %s204_s27  ;;  %s208_s8 = scalar_lea.vmem (!%p861_p10), [#allocation2], %s404_s5 }
  0x50   : > { %600 = dma.done.wait (%p862_p1), %s205_s6, 128  }
  0x51   : > { %602 = vsyncadd (%p862_p1), %s205_s6, 4294967168  ;;  %s214_s30 = scalar_lea.sflag [#allocation6], %s204_s27  ;;  %s217_s18 = scalar_lea.vmem [#allocation5], %s404_s5 }
  0x52   : > { %604 = dma.done.wait (%p862_p1), %s214_s30, 128  }
  0x53   : > { %606 = vsyncadd (%p862_p1), %s214_s30, 4294967168  ;;  %p246_p8 = scmp.eq.s32.totalorder %s625_s12, 0 }
  0x54   : > { %v637_v0 = vmov (%p246_p8), 0.0  }
  0x55   : > { %251 = sbr.rel (!%p246_p8) target bundleno = 92 (0x5c), region = 40  ;;  %252 = vst [vmem:[#allocation7] sm:$0x1] (%p246_p8), %v637_v0 }
  0x5c PF: > { %v253_v1 = vld [vmem:[%s208_s8] sm:$0xff]  ;;  %v254_v2 = vld [vmem:[%s217_s18] sm:$0xff]  ;;  %v277_v14 = vlaneseq  ;;  %s407_s20 = sshll.u32 %s625_s12, 3  ;;  %vm284_vm1 = vcmask 7168   ;;  %s638_s12 = smov [#allocation7]  }
  0x5d   : > { %255 = vmax.xlane.f32.xlu0 %v253_v1  ;;  %v279_v16 = vstv %s407_s20  ;;  %v283_v31 = vld [vmem:[#allocation7] sm:$0x1]  ;;  %s307_s3 = sshll.u32 %s638_s12, 4  ;;  %p808_p11 = scmp.eq.s32.totalorder %s396_s15, 1  ;;  %s308_s3 = int_to_ptr.vmem [resolvable:$true] %s307_s3 }
  0x5e   : > { %v278_v15 = vshrl.u32 %v277_v14, 7  ;;  %s549_s9 = scalar_lea.vmem %s308_s3, 16  ;;  %s555_s28 = scalar_lea.vmem %s308_s3, 32 }
  0x5f   : > { %p550_p9 = scmp.ne.s32.totalorder %s308_s3, %s549_s9  ;;  %p556_p6 = scmp.lt.s32.totalorder %s308_s3, %s308_s3 }
  0x60   : > { %v280_v17 = vadd.s32 %v279_v16, %v278_v15  ;;  %p557_p3 = scmp.lt.s32.totalorder %s555_s28, %s549_s9 }
  0x61   : > { %257 = vmax.xlane.f32.xlu0 %v254_v2  ;;  %p551_p4 = pnand %p550_p9, %p808_p11 }
  0x62   : > { %vm281_vm0 = vcmp.lt.s32.totalorder %v280_v17, 12  ;;  %p558_p7 = por %p557_p3, %p556_p6 }
  0x63   : > { %p552_p5 = pneg %p551_p4 }
  0x65   : > { %p559_p12 = pnand %p558_p7, %p552_p5 }
  0xea   : > { %v256_v3 = vpop.xlane.xlu0 %255 }
  0xeb   : > { %v259_v4 = vsub.f32 %v253_v1, %v256_v3 }
  0xed   : > { %v260_v5 = vmul.f32 1.442695, %v259_v4 }
  0xee   : > { %v258_v6 = vpop.xlane.xlu0 %257 }
  0xef   : > { %v264_v7 = vsub.f32 %v254_v2, %v258_v6  ;;  %483 = vpow2.f32 %v260_v5  ;;  %v269_v19 = vadd.f32 %v258_v6, %v256_v3 }
  0xf1   : > { %v265_v8 = vmul.f32 1.442695, %v264_v7 }
  0xf3   : > { %485 = vpow2.f32 %v265_v8 }
  0xf9   : > { %v484_v9 = vpop.eup %483 }
  0xfa   : > { %262 = vadd.xlane.f32.xlu1 %v484_v9 }
  0xfd   : > { %v486_v10 = vpop.eup %485 }
  0xfe   : > { %267 = vadd.xlane.f32.xlu1 %v486_v10 }
 0x187   : > { %v263_v11 = vpop.xlane.xlu1 %262 }
 0x18b   : > { %v268_v12 = vpop.xlane.xlu1 %267 }
 0x18c   : > { %v270_v13 = vmul.f32 %v268_v12, %v263_v11 }
 0x18e   : > { %487 = vlog2.f32 %v270_v13 }
 0x198   : > { %v488_v18 = vpop.eup %487 }
 0x199   : > { %v272_v20 = vmul.f32 0.6931472, %v488_v18 }
 0x19b   : > { %v273_v21 = vadd.f32 %v272_v20, %v269_v19 }
 0x19d   : > { %v282_v22 = vsel %vm281_vm0, %v273_v21, 0.0 }
 0x19e   : > { %v285_v23 = vsel %vm284_vm1, %v282_v22, 0.0 }
 0x19f   : > { %286 = vadd.xlane.f32.xlu0 %v285_v23 }
 0x22c   : > { %v287_v24 = vpop.xlane.xlu0 %286 }
 0x22d   : > { %v288_v25 = vrot.slane %v287_v24, 4 }
 0x22f   : > { %v289_v26 = vadd.f32 %v288_v25, %v287_v24 }
 0x231   : > { %v290_v27 = vrot.slane %v289_v26, 2 }
 0x233   : > { %v291_v28 = vadd.f32 %v290_v27, %v289_v26 }
 0x235   : > { %v292_v29 = vrot.slane %v291_v28, 1 }
 0x237   : > { %v293_v30 = vadd.f32 %v292_v29, %v291_v28 }
 0x239   : > { %413 = vpush %v293_v30 }
 0x26a   : > { %s414_s29 = spop %413 }
 0x26b   : > { %v295_v32 = vstv %s414_s29 }
 0x26c   : > { %v296_v33 = vadd.f32 %v295_v32, %v283_v31 }
 0x26e   : > { %297 = vst [vmem:[#allocation7] sm:$0x1] %v296_v33 }
 0x26f   : > { %562 = shalt.err (!%p559_p12)
}
 0x270   : > { %s563_s23 = scalar_lea.hbm %s854_s2, 16 }
 0x271   : > { %p564_p13 = scmp.ne.s32.totalorder %s854_s2, %s563_s23  ;;  %p569_p10 = scmp.lt.u32.totalorder %s563_s23, %s854_s2 }
 0x273   : > { %p565_p0 = pnand %p564_p13, %p808_p11 }
 0x275   : > { %p566_p2 = pneg %p565_p0 }
 0x277   : > { %p571_p1 = pnand %p569_p10, %p566_p2 }
 0x279   : > { %574 = shalt.err (!%p571_p1)
}
 0x27a   : > { %420 = dma.vmem_to_hbm [thread:$0]  (%p808_p11), %s308_s3, 16, %s854_s2, [#allocation4]  }
 0x27b   : > { %608 = dma.done.wait (%p808_p11), [#allocation4], 16  }
 0x27c   : > { %610 = vsyncadd (%p808_p11), [#allocation4], 4294967280 }
 0x27d PF: > { %s19_s14 = sadd.s32 1, %s633_s14   ;;  %s864_s9 = smov %s617_s10 }
 0x27e   : > { %p16_p8 = scmp.ge.s32.totalorder %s19_s14, 4   ;;  %s865_s10 = smov %s621_s11 }
 0x27f   : > { %s866_s11 = smov %s710_s24  ;;  %s867_s12 = smov %s629_s13 }
 0x280   : > { %s868_s13 = smov %s870_s16  ;;  %18 = sbr.rel (!%p16_p8) target bundleno = 7 (0x7), region = 83 }
 0x287   :  { %320 = vsyncpa [#allocation3], 1 }
 0x288   :  { %322 = vsyncpa [#allocation3 + $0x1], 1 }
 0x289   :  { %323 = vsyncpa [#allocation6], 1 }
 0x28a   :  { %325 = vsyncpa [#allocation6 + $0x1], 1 }
 0x28b   :  { %326 = vsyncpa [#allocation4], 1 }
 0x28c   :  { %328 = vsyncpa [#allocation4 + $0x1], 1 }

</bundles_post_ra>
